<compile_context>
chip_gen: v7x
topology: tpu7x:2x2x1
jax: 0.10.0
libtpu: 0.0.40
codegen_flags: <defaults>
</compile_context>

<pallas_src>
import functools

import jax
import jax.numpy as jnp
import numpy as np
from jax.experimental import pallas as pl
from jax.experimental.pallas import tpu as pltpu

IN_DIM = 350
OUT_DIM = 350
TILE_B_MAX = 2048   # rows; double-buffered f32 x/z/out tiles ~22 MiB -> fits v7x


def _round_up(x, m):
    return ((x + m - 1) // m) * m


def _generator_kernel(x_ref, z_ref, w_ref, o_ref, *, mxu_bf16):
    x = x_ref[...]                       # (tile_b, 350) f32
    z = z_ref[...]                       # (tile_b, 350) f32
    w = w_ref[...]                       # (350, 350), (in, out) layout
    lhs = x.astype(jnp.bfloat16) if mxu_bf16 else x
    # Plain (M,K)x(K,N) MXU matmul with f32 accumulation.  K = N = 350 are
    # handled by Mosaic's internal (8,128) padding/masking, so no explicit
    # feature-dim padding is needed on the activations.
    mapped_x = jnp.dot(lhs, w, preferred_element_type=jnp.float32)
    # Strength-reduced blend: z*m + (1-z)*x == x + z*(m - x)   (exact in f32)
    o_ref[...] = (x + z * (mapped_x - x)).astype(o_ref.dtype)


def prepare_generator_weight(weight, mxu_bf16=False):
    """One-time init: PyTorch (out, in) weight -> (in, out) layout so the
    kernel contracts LHS dim 1 with RHS dim 0 (no per-step weight transpose)."""
    w_t = jnp.asarray(weight).T
    return w_t.astype(jnp.bfloat16) if mxu_bf16 else w_t


def _choose_tile_b(B):
    if B < 8:
        return B  # full-dim block -> exempt from the 8-row sublane rule
    # Aim for >= 2 grid steps once B >= 16 so ("parallel",) can shard the
    # batch across both v7x TensorCores; multiple of 8 rows; capped for VMEM.
    target = _round_up(pl.cdiv(B, 2), 8)
    return max(8, min(TILE_B_MAX, target))


def generator_forward(x, z, w_t, *, mxu_bf16=False):
    """x, z: (B, 350); w_t: (350, 350) pre-transposed (in, out) weight."""
    B, D = x.shape
    assert D == IN_DIM and w_t.shape == (IN_DIM, OUT_DIM)
    # TODO(synk): broadcasting a smaller z (if the original model relies on it)
    # is not handled; z must match x's shape.
    assert z.shape == x.shape

    tile_b = _choose_tile_b(B)
    grid = (pl.cdiv(B, tile_b),)   # partial last block: OOB rows masked on store

    kernel = functools.partial(_generator_kernel, mxu_bf16=mxu_bf16)

    cost = pl.CostEstimate(
        flops=2 * B * IN_DIM * OUT_DIM + 3 * B * OUT_DIM,
        bytes_accessed=3 * B * IN_DIM * x.dtype.itemsize
        + IN_DIM * OUT_DIM * w_t.dtype.itemsize,
        transcendentals=0,
    )

    return pl.pallas_call(
        kernel,
        out_shape=jax.ShapeDtypeStruct((B, OUT_DIM), x.dtype),
        grid_spec=pltpu.PrefetchScalarGridSpec(
            num_scalar_prefetch=0,
            grid=grid,
            in_specs=[
                pl.BlockSpec((tile_b, IN_DIM), lambda i: (i, 0)),
                pl.BlockSpec((tile_b, IN_DIM), lambda i: (i, 0)),
                # Constant block index -> weight is DMA'd once, VMEM-resident.
                pl.BlockSpec((IN_DIM, OUT_DIM), lambda i: (0, 0)),
            ],
            out_specs=pl.BlockSpec((tile_b, OUT_DIM), lambda i: (i, 0)),
        ),
        compiler_params=pltpu.CompilerParams(
            dimension_semantics=("parallel",),
            # Large double-buffered tiles exceed v5e's 16 MiB default scoped
            # VMEM; raise explicitly (still within v7x's 64 MiB physical).
            vmem_limit_bytes=64 << 20,
        ),
        cost_estimate=cost,
    )(x, z, w_t)


if __name__ == "__main__":
    key = jax.random.PRNGKey(0)
    kx, kz, kw = jax.random.split(key, 3)

    B = 8  # small batch for the demo
    x = jax.random.normal(kx, (B, IN_DIM), dtype=jnp.float32)
    # z is a gating tensor with the same shape as x, values in [0, 1]
    z = jax.random.uniform(kz, (B, IN_DIM), dtype=jnp.float32)

    # Deterministic weight mimicking nn.Linear default init (uniform +/- 1/sqrt(in_dim))
    bound = 1.0 / np.sqrt(IN_DIM)
    weight = jax.random.uniform(
        kw, (OUT_DIM, IN_DIM), dtype=jnp.float32, minval=-bound, maxval=bound
    )

    w_t = prepare_generator_weight(weight)   # one-time (out,in) -> (in,out)
    out = generator_forward(x, z, w_t)
    out = jax.block_until_ready(out)

    # Pure-JAX reference for correctness
    ref = z * (x @ weight.T) + (1.0 - z) * x
    np.testing.assert_allclose(np.asarray(out), np.asarray(ref), rtol=1e-5, atol=1e-5)

    print("KERNEL_OK")
</pallas_src>

<mosaic_0001>
module attributes {stable_mosaic.version = 11 : i64} {
  func.func @_generator_kernel(%arg0: i32, %arg1: memref<8x350xf32, #tpu.memory_space<vmem>>, %arg2: memref<8x350xf32, #tpu.memory_space<vmem>>, %arg3: memref<350x350xf32, #tpu.memory_space<vmem>>, %arg4: memref<8x350xf32, #tpu.memory_space<vmem>>) attributes {dimension_semantics = [#tpu.dimension_semantics<parallel>], iteration_bounds = array<i64: 1>, scalar_prefetch = 0 : i64, scratch_operands = 0 : i64, tpu.core_type = #tpu.core_type<tc>, window_params = [{transform_indices = @transform_0, window_bounds = array<i64: 8, 350>}, {transform_indices = @transform_1, window_bounds = array<i64: 8, 350>}, {pipeline_mode = #tpu.pipeline_mode<synchronous>, transform_indices = @transform_2, window_bounds = array<i64: 350, 350>}, {transform_indices = @transform_3, window_bounds = array<i64: 8, 350>}]} {
    %c0 = arith.constant 0 : index
    %c0_0 = arith.constant 0 : index
    %0 = vector.load %arg1[%c0, %c0_0] : memref<8x350xf32, #tpu.memory_space<vmem>>, vector<8x350xf32>
    %c0_1 = arith.constant 0 : index
    %c0_2 = arith.constant 0 : index
    %1 = vector.load %arg2[%c0_1, %c0_2] : memref<8x350xf32, #tpu.memory_space<vmem>>, vector<8x350xf32>
    %c0_3 = arith.constant 0 : index
    %c0_4 = arith.constant 0 : index
    %2 = vector.load %arg3[%c0_3, %c0_4] : memref<350x350xf32, #tpu.memory_space<vmem>>, vector<350x350xf32>
    %cst = arith.constant dense<0.000000e+00> : vector<8x350xf32>
    %3 = tpu.matmul %0, %2, %cst {dimension_numbers = #tpu.dot_dimension_numbers<[1], [0], [0], [1], [0, 0, 1, 1], [], []>} : vector<8x350xf32>, vector<350x350xf32>, vector<8x350xf32> -> vector<8x350xf32>
    %4 = arith.subf %3, %0 : vector<8x350xf32>
    %5 = arith.mulf %1, %4 : vector<8x350xf32>
    %6 = arith.addf %0, %5 : vector<8x350xf32>
    %c0_5 = arith.constant 0 : index
    %c0_6 = arith.constant 0 : index
    %7 = vector.load %arg4[%c0_5, %c0_6] : memref<8x350xf32, #tpu.memory_space<vmem>>, vector<8x350xf32>
    tpu.vector_store %arg4[%c0_5, %c0_6], %6 {strides = array<i32>} : memref<8x350xf32, #tpu.memory_space<vmem>>, vector<8x350xf32>,
    return
  }
  func.func @transform_0(%arg0: i32) -> (i32, i32) {
    %c0_i32 = arith.constant 0 : i32
    %c0_i32_0 = arith.constant 0 : i32
    return %arg0, %c0_i32 : i32, i32
  }
  func.func @transform_1(%arg0: i32) -> (i32, i32) {
    %c0_i32 = arith.constant 0 : i32
    %c0_i32_0 = arith.constant 0 : i32
    return %arg0, %c0_i32 : i32, i32
  }
  func.func @transform_2(%arg0: i32) -> (i32, i32) {
    %c0_i32 = arith.constant 0 : i32
    %c0_i32_0 = arith.constant 0 : i32
    %c0_i32_1 = arith.constant 0 : i32
    return %c0_i32, %c0_i32_0 : i32, i32
  }
  func.func @transform_3(%arg0: i32) -> (i32, i32) {
    %c0_i32 = arith.constant 0 : i32
    %c0_i32_0 = arith.constant 0 : i32
    return %arg0, %c0_i32 : i32, i32
  }
}

</mosaic_0001>

<bundles_post_ra>
// kernel: tpu_custom_call.1
= control target key start
LH: loop header
LB: loop body
LE: loop exit
PB: predicated region body
PF: predicated region fallthrough
CT: control target
= control target key end

     0   :  { %8 = vsyncpa [#allocation3], 0  ;;  %s946_s0 = inlined_call_operand.hbm [shape: f32[8,350], index: 0, kind: input, shape index: {}]   ;;  %s947_s1 = inlined_call_operand.hbm [shape: f32[8,350], index: 1, kind: input, shape index: {}]   ;;  %s948_s2 = inlined_call_operand.hbm [shape: f32[350,350], index: 2, kind: input, shape index: {}]   ;;  %s949_s3 = inlined_call_operand.hbm [shape: f32[8,350], index: 3, kind: output, shape index: {}]  }
   0x1   :  { %9 = vsyncpa [#allocation6], 0 }
   0x2   :  { %10 = vsyncpa [#allocation4], 0  ;;  %s841_s12 = smov [#allocation5]   ;;  %s842_s14 = smov [#allocation2]  }
   0x3   :  { %s27_s13 = sshll.u32 %s841_s12, 4  ;;  %s17_s15 = sshll.u32 %s842_s14, 4  ;;  %s28_s13 = int_to_ptr.vmem [resolvable:$true] %s27_s13  ;;  %s18_s15 = int_to_ptr.vmem [resolvable:$true] %s17_s15 }
   0x4   :  { %s747_s18 = scalar_lea.hbm %s947_s1, 384 }
   0x5   :  { %p748_p0 = scmp.ne.s32.totalorder %s947_s1, %s747_s18  ;;  %p751_p1 = scmp.lt.u32.totalorder %s747_s18, %s947_s1 }
   0x7   :  { %p753_p2 = pnand %p751_p1, %p748_p0 }
   0x9   :  { %756 = shalt.err (!%p753_p2)
}
   0xa   :  { %s757_s23 = scalar_lea.vmem %s28_s13, 384  ;;  %p762_p4 = scmp.lt.s32.totalorder %s28_s13, %s28_s13 }
   0xb   :  { %p758_p3 = scmp.ne.s32.totalorder %s28_s13, %s757_s23  ;;  %p763_p5 = scmp.lt.s32.totalorder %s757_s23, %s757_s23 }
   0xd   :  { %p764_p6 = por %p763_p5, %p762_p4 }
   0xf   :  { %p765_p7 = pnand %p764_p6, %p758_p3 }
  0x11   :  { %768 = shalt.err (!%p765_p7)
}
  0x12   :  { %30 = dma.hbm_to_vmem [thread:$0]  %s947_s1, 384, %s28_s13, [#allocation6]  }
  0x13   :  { %s769_s28 = scalar_lea.hbm %s946_s0, 384 }
  0x14   :  { %p770_p8 = scmp.ne.s32.totalorder %s946_s0, %s769_s28  ;;  %p773_p9 = scmp.lt.u32.totalorder %s769_s28, %s946_s0 }
  0x16   :  { %p775_p10 = pnand %p773_p9, %p770_p8 }
  0x18   :  { %778 = shalt.err (!%p775_p10)
}
  0x19   :  { %s779_s6 = scalar_lea.vmem %s18_s15, 384  ;;  %p784_p12 = scmp.lt.s32.totalorder %s18_s15, %s18_s15 }
  0x1a   :  { %p780_p11 = scmp.ne.s32.totalorder %s18_s15, %s779_s6  ;;  %p785_p13 = scmp.lt.s32.totalorder %s779_s6, %s779_s6 }
  0x1c   :  { %p786_p0 = por %p785_p13, %p784_p12 }
  0x1e   :  { %p787_p1 = pnand %p786_p0, %p780_p11 }
  0x20   :  { %790 = shalt.err (!%p787_p1)
}
  0x21   :  { %20 = dma.hbm_to_vmem [thread:$0]  %s946_s0, 384, %s18_s15, [#allocation3]  }
  0x22   :  { %s843_s8 = smov [#allocation7]   ;;  %s791_s12 = scalar_lea.hbm %s948_s2, 16896 }
  0x23   :  { %s36_s9 = sshll.u32 %s843_s8, 4  ;;  %p792_p2 = scmp.ne.s32.totalorder %s948_s2, %s791_s12  ;;  %s37_s9 = int_to_ptr.vmem [resolvable:$true] %s36_s9 }
  0x24   :  { %p795_p3 = scmp.lt.u32.totalorder %s791_s12, %s948_s2 }
  0x26   :  { %p797_p4 = pnand %p795_p3, %p792_p2 }
  0x28   :  { %800 = shalt.err (!%p797_p4)
}
  0x29   :  { %s801_s18 = scalar_lea.vmem %s37_s9, 16896  ;;  %p806_p6 = scmp.lt.s32.totalorder %s37_s9, %s37_s9 }
  0x2a   :  { %p802_p5 = scmp.ne.s32.totalorder %s37_s9, %s801_s18  ;;  %p807_p7 = scmp.lt.s32.totalorder %s801_s18, %s801_s18 }
  0x2c   :  { %p808_p8 = por %p807_p7, %p806_p6 }
  0x2e   :  { %p809_p9 = pnand %p808_p8, %p802_p5 }
  0x30   :  { %812 = shalt.err (!%p809_p9)
}
  0x31   :  { %s844_s0 = smov 384   ;;  %s845_s15 = smov 24  }
  0x32   :  { %42 = dma.hbm_to_vmem [thread:$0]  %s948_s2, 16896, %s37_s9, [#allocation6], %s844_s0, %s844_s0, %s845_s15  }
  0x33   :  { %835 = dma.done.wait [#allocation3], 384  }
  0x34   :  { %836 = vsyncadd [#allocation3], 4294966912 }
  0x35   :  { %837 = dma.done.wait [#allocation6], 17280  }
  0x36   :  { %838 = vsyncadd [#allocation6], 4294950016  ;;  %v846_v0 = vmov 0.0   ;;  %v59_v1 = vld [vmem:[#allocation7 + $0x8] sm:$0xff]  ;;  %v62_v2 = vld [vmem:[#allocation7 + $0x20] sm:$0xff]  ;;  %vm194_vm0 = vcmask 1045504  }
  0x37   :  { %339 = vmatprep.mubr.f32.mxu1 %v846_v0  ;;  %v155_v3 = vld [vmem:[#allocation7 + $0x308] sm:$0xff]  ;;  %v594_v4 = vpack.c.bf16 %v62_v2, %v59_v1  ;;  %v158_v5 = vld [vmem:[#allocation7 + $0x320] sm:$0xff]  ;;  %v61_v7 = vld [vmem:[#allocation7 + $0x18] sm:$0xff]  ;;  %vm847_vm1 = vmmov 1   ;;  %vm190_vm3 = vcmask 769024   ;;  %vm849_vm4 = vmmov 0  }
  0x38   :  { %v58_v6 = vld [vmem:[#allocation7] sm:$0xff]  ;;  %v658_v8 = vpack.c.bf16 %v158_v5, %v155_v3  ;;  %v157_v11 = vld [vmem:[#allocation7 + $0x318] sm:$0xff]  ;;  %v68_v14 = vld [vmem:[#allocation7 + $0x50] sm:$0xff]  ;;  %s850_s2 = smov [#allocation8]  }
  0x39   :  { %v596_v9 = vpack.c.bf16 %v61_v7, %v58_v6  ;;  %v154_v10 = vld [vmem:[#allocation7 + $0x300] sm:$0xff]  ;;  %v65_v12 = vld [vmem:[#allocation7 + $0x38] sm:$0xff]  ;;  %595 = vmatprep.subr.bf16.mxu0 %v594_v4  ;;  %v164_v16 = vld [vmem:[#allocation7 + $0x350] sm:$0xff]  ;;  %s504_s21 = sshll.u32 %s850_s2, 4  ;;  %s505_s21 = int_to_ptr.vmem [resolvable:$true] %s504_s21 }
  0x3a   :  { %v660_v13 = vpack.c.bf16 %v157_v11, %v154_v10  ;;  %v161_v15 = vld [vmem:[#allocation7 + $0x338] sm:$0xff]  ;;  %659 = vmatprep.subr.bf16.mxu1 %v658_v8  ;;  %v598_v17 = vpack.c.bf16 %v68_v14, %v65_v12  ;;  %v64_v19 = vld [vmem:[#allocation7 + $0x30] sm:$0xff]  ;;  %v67_v20 = vld [vmem:[#allocation7 + $0x48] sm:$0xff]  ;;  %s813_s22 = scalar_lea.vmem %s505_s21, 384  ;;  %p818_p11 = scmp.lt.s32.totalorder %s505_s21, %s505_s21 }
  0x3b   :  { %597 = vmatpush1.bf16.msra.mxu0 %v596_v9  ;;  %v662_v18 = vpack.c.bf16 %v164_v16, %v161_v15  ;;  %v160_v21 = vld [vmem:[#allocation7 + $0x330] sm:$0xff]  ;;  %v600_v22 = vpack.c.bf16 %v67_v20, %v64_v19  ;;  %v163_v23 = vld [vmem:[#allocation7 + $0x348] sm:$0xff]  ;;  %v74_v25 = vld [vmem:[#allocation7 + $0x80] sm:$0xff]  ;;  %p814_p10 = scmp.ne.s32.totalorder %s505_s21, %s813_s22  ;;  %p819_p12 = scmp.lt.s32.totalorder %s813_s22, %s813_s22 }
  0x3c   :  { %661 = vmatpush1.bf16.msra.mxu1 %v660_v13  ;;  %v71_v24 = vld [vmem:[#allocation7 + $0x68] sm:$0xff]  ;;  %599 = vmatprep.subr.bf16.mxu0 %v598_v17  ;;  %v664_v26 = vpack.c.bf16 %v163_v23, %v160_v21  ;;  %v170_v29 = vld [vmem:[#allocation7 + $0x380] sm:$0xff]  ;;  %v73_v32 = vld [vmem:[#allocation7 + $0x78] sm:$0xff] }
  0x3d   :  { %663 = vmatprep.subr.bf16.mxu1 %v662_v18  ;;  %v602_v27 = vpack.c.bf16 %v74_v25, %v71_v24  ;;  %v167_v28 = vld [vmem:[#allocation7 + $0x368] sm:$0xff]  ;;  %v70_v30 = vld [vmem:[#allocation7 + $0x60] sm:$0xff]  ;;  %v169_v34 = vld [vmem:[#allocation7 + $0x378] sm:$0xff]  ;;  %p820_p13 = por %p819_p12, %p818_p11 }
  0x3e   :  { %v666_v31 = vpack.c.bf16 %v170_v29, %v167_v28  ;;  %v166_v33 = vld [vmem:[#allocation7 + $0x360] sm:$0xff]  ;;  %v604_v35 = vpack.c.bf16 %v73_v32, %v70_v30  ;;  %v77_v36 = vld [vmem:[#allocation7 + $0x98] sm:$0xff]  ;;  %v80_v37 = vld [vmem:[#allocation7 + $0xb0] sm:$0xff] }
  0x3f   :  { %601 = vmatpush1.bf16.msra.mxu0 %v600_v22  ;;  %v173_v38 = vld [vmem:[#allocation7 + $0x398] sm:$0xff]  ;;  %v668_v39 = vpack.c.bf16 %v169_v34, %v166_v33  ;;  %v606_v40 = vpack.c.bf16 %v80_v37, %v77_v36  ;;  %v176_v41 = vld [vmem:[#allocation7 + $0x3b0] sm:$0xff]  ;;  %v79_v43 = vld [vmem:[#allocation7 + $0xa8] sm:$0xff]  ;;  %p821_p0 = pnand %p820_p13, %p814_p10 }
  0x40   :  { %665 = vmatpush1.bf16.msra.mxu1 %v664_v26  ;;  %603 = vmatprep.subr.bf16.mxu0 %v602_v27  ;;  %v76_v42 = vld [vmem:[#allocation7 + $0x90] sm:$0xff]  ;;  %v670_v44 = vpack.c.bf16 %v176_v41, %v173_v38  ;;  %v175_v46 = vld [vmem:[#allocation7 + $0x3a8] sm:$0xff]  ;;  %v86_v48 = vld [vmem:[#allocation7 + $0xe0] sm:$0xff] }
  0x41   :  { %667 = vmatprep.subr.bf16.mxu1 %v666_v31  ;;  %v172_v45 = vld [vmem:[#allocation7 + $0x390] sm:$0xff]  ;;  %v83_v47 = vld [vmem:[#allocation7 + $0xc8] sm:$0xff]  ;;  %v182_v50 = vld [vmem:[#allocation7 + $0x3e0] sm:$0xff]  ;;  %v608_v51 = vpack.c.bf16 %v79_v43, %v76_v42 }
  0x42   :  { %v179_v49 = vld [vmem:[#allocation7 + $0x3c8] sm:$0xff]  ;;  %v672_v52 = vpack.c.bf16 %v175_v46, %v172_v45  ;;  %v610_v53 = vpack.c.bf16 %v86_v48, %v83_v47  ;;  %v82_v54 = vld [vmem:[#allocation7 + $0xc0] sm:$0xff]  ;;  %v85_v55 = vld [vmem:[#allocation7 + $0xd8] sm:$0xff] }
  0x43   :  { %605 = vmatpush1.bf16.msra.mxu0 %v604_v35  ;;  %v178_v56 = vld [vmem:[#allocation7 + $0x3c0] sm:$0xff]  ;;  %v674_v57 = vpack.c.bf16 %v182_v50, %v179_v49  ;;  %v181_v58 = vld [vmem:[#allocation7 + $0x3d8] sm:$0xff]  ;;  %v92_v60 = vld [vmem:[#allocation7 + $0x110] sm:$0xff]  ;;  %v612_v63 = vpack.c.bf16 %v85_v55, %v82_v54 }
  0x44   :  { %669 = vmatpush1.bf16.msra.mxu1 %v668_v39  ;;  %607 = vmatprep.subr.bf16.mxu0 %v606_v40  ;;  %v89_v59 = vld [vmem:[#allocation7 + $0xf8] sm:$0xff]  ;;  %v188_v62 = vld [vmem:[#allocation7 + $0x410] sm:$0x3f]  ;;  %v676_v1 = vpack.c.bf16 %v181_v58, %v178_v56  ;;  %v91_v4 = vld [vmem:[#allocation7 + $0x108] sm:$0xff] }
  0x45   :  { %671 = vmatprep.subr.bf16.mxu1 %v670_v44  ;;  %v185_v61 = vld [vmem:[#allocation7 + $0x3f8] sm:$0xff]  ;;  %v614_v2 = vpack.c.bf16 %v92_v60, %v89_v59  ;;  %v88_v3 = vld [vmem:[#allocation7 + $0xf0] sm:$0xff]  ;;  %v187_v7 = vld [vmem:[#allocation7 + $0x408] sm:$0x3f] }
  0x46   :  { %v184_v5 = vld [vmem:[#allocation7 + $0x3f0] sm:$0xff]  ;;  %v678_v6 = vpack.c.bf16 %v188_v62, %v185_v61  ;;  %v95_v8 = vld [vmem:[#allocation7 + $0x128] sm:$0xff]  ;;  %v98_v9 = vld [vmem:[#allocation7 + $0x140] sm:$0xff]  ;;  %v616_v13 = vpack.c.bf16 %v91_v4, %v88_v3 }
  0x47   :  { %609 = vmatpush1.bf16.msra.mxu0 %v608_v51  ;;  %vm908_vm2 = vmpackc.low %vm194_vm0, %vm847_vm1  ;;  %v108_v11 = vld [vmem:[#allocation7 + $0x190] sm:$0xff]  ;;  %v111_v12 = vld [vmem:[#allocation7 + $0x1a8] sm:$0xff]  ;;  %v681_v14 = vpack.c.bf16 %v187_v7, %v184_v5  ;;  %v618_v15 = vpack.c.bf16 %v98_v9, %v95_v8 }
  0x48   :  { %673 = vmatpush1.bf16.msra.mxu1 %v672_v52  ;;  %611 = vmatprep.subr.bf16.mxu0 %v610_v53  ;;  %v94_v16 = vld [vmem:[#allocation7 + $0x120] sm:$0xff]  ;;  %v97_v17 = vld [vmem:[#allocation7 + $0x138] sm:$0xff]  ;;  %v60_v18 = vld [vmem:[#allocation7 + $0x10] sm:$0xff]  ;;  %v684_v19 = vpack.c.bf16 %v111_v12, %v108_v11 }
  0x49   :  { %675 = vmatprep.subr.bf16.mxu1 %v674_v57  ;;  %v63_v20 = vld [vmem:[#allocation7 + $0x28] sm:$0xff]  ;;  %v101_v21 = vld [vmem:[#allocation7 + $0x158] sm:$0xff]  ;;  %v104_v22 = vld [vmem:[#allocation7 + $0x170] sm:$0xff]  ;;  %v620_v26 = vpack.c.bf16 %v97_v17, %v94_v16 }
  0x4a   :  { %v114_v23 = vld [vmem:[#allocation7 + $0x1c0] sm:$0xff]  ;;  %v117_v24 = vld [vmem:[#allocation7 + $0x1d8] sm:$0xff]  ;;  %v686_v27 = vpack.c.bf16 %v63_v20, %v60_v18  ;;  %v622_v28 = vpack.c.bf16 %v104_v22, %v101_v21  ;;  %v100_v29 = vld [vmem:[#allocation7 + $0x150] sm:$0xff] }
  0x4b   :  { %613 = vmatpush1.bf16.msra.mxu0 %v612_v63  ;;  %v914_v25 = vld [vmem:[#allocation2 + $0x10] sm:$0xff]  ;;  %v103_v30 = vld [vmem:[#allocation7 + $0x168] sm:$0xff]  ;;  %v688_v32 = vpack.c.bf16 %v117_v24, %v114_v23  ;;  %v69_v33 = vld [vmem:[#allocation7 + $0x58] sm:$0xff] }
  0x4c   :  { %677 = vmatpush1.bf16.msra.mxu1 %v676_v1  ;;  %615 = vmatprep.subr.bf16.mxu0 %v614_v2  ;;  %v66_v31 = vld [vmem:[#allocation7 + $0x40] sm:$0xff]  ;;  %v107_v34 = vld [vmem:[#allocation7 + $0x188] sm:$0xff]  ;;  %v120_v36 = vld [vmem:[#allocation7 + $0x1f0] sm:$0xff]  ;;  %v624_v38 = vpack.c.bf16 %v103_v30, %v100_v29 }
  0x4d   :  { %680 = vmatprep.subr.msk.bf16.mxu1 %vm908_vm2, %v678_v6  ;;  %v110_v35 = vld [vmem:[#allocation7 + $0x1a0] sm:$0xff]  ;;  %v123_v37 = vld [vmem:[#allocation7 + $0x208] sm:$0xff]  ;;  %v690_v39 = vpack.c.bf16 %v69_v33, %v66_v31  ;;  %v109_v42 = vld [vmem:[#allocation7 + $0x198] sm:$0xff] }
  0x4e   :  { %v626_v40 = vpack.c.bf16 %v110_v35, %v107_v34  ;;  %v106_v41 = vld [vmem:[#allocation7 + $0x180] sm:$0xff]  ;;  %v72_v43 = vld [vmem:[#allocation7 + $0x70] sm:$0xff]  ;;  %v692_v44 = vpack.c.bf16 %v123_v37, %v120_v36  ;;  %v75_v45 = vld [vmem:[#allocation7 + $0x88] sm:$0xff] }
  0x4f   :  { %617 = vmatpush1.bf16.msra.mxu0 %v616_v13  ;;  %v113_v46 = vld [vmem:[#allocation7 + $0x1b8] sm:$0xff]  ;;  %v116_v47 = vld [vmem:[#allocation7 + $0x1d0] sm:$0xff]  ;;  %v126_v48 = vld [vmem:[#allocation7 + $0x220] sm:$0xff]  ;;  %v628_v50 = vpack.c.bf16 %v109_v42, %v106_v41  ;;  %v694_v51 = vpack.c.bf16 %v75_v45, %v72_v43 }
  0x50   :  { %683 = vmatpush1.bf16.msk.msra.mxu1 %vm908_vm2, %v681_v14  ;;  %619 = vmatprep.subr.bf16.mxu0 %v618_v15  ;;  %v129_v49 = vld [vmem:[#allocation7 + $0x238] sm:$0xff]  ;;  %v630_v52 = vpack.c.bf16 %v116_v47, %v113_v46  ;;  %v112_v53 = vld [vmem:[#allocation7 + $0x1b0] sm:$0xff]  ;;  %v115_v54 = vld [vmem:[#allocation7 + $0x1c8] sm:$0xff] }
  0x51   :  { %685 = vmatprep.subr.bf16.mxu1 %v684_v19  ;;  %v78_v55 = vld [vmem:[#allocation7 + $0xa0] sm:$0xff]  ;;  %v696_v56 = vpack.c.bf16 %v129_v49, %v126_v48  ;;  %v81_v57 = vld [vmem:[#allocation7 + $0xb8] sm:$0xff]  ;;  %v119_v58 = vld [vmem:[#allocation7 + $0x1e8] sm:$0xff]  ;;  %v632_v62 = vpack.c.bf16 %v115_v54, %v112_v53 }
  0x52   :  { %v122_v59 = vld [vmem:[#allocation7 + $0x200] sm:$0xff]  ;;  %v132_v60 = vld [vmem:[#allocation7 + $0x250] sm:$0xff]  ;;  %v135_v61 = vld [vmem:[#allocation7 + $0x268] sm:$0xff]  ;;  %v698_v1 = vpack.c.bf16 %v81_v57, %v78_v55 }
  0x53   :  { %516 = vmatmul.mubr.msk.f32.vlgmr.msra.gmra.mrb[0].mxu1 %vm190_vm3, %v914_v25  ;;  %621 = vmatpush1.bf16.msra.mxu0 %v620_v26  ;;  %v118_v63 = vld [vmem:[#allocation7 + $0x1e0] sm:$0xff]  ;;  %v634_v2 = vpack.c.bf16 %v122_v59, %v119_v58  ;;  %v121_v3 = vld [vmem:[#allocation7 + $0x1f8] sm:$0xff]  ;;  %v84_v4 = vld [vmem:[#allocation7 + $0xd0] sm:$0xff]  ;;  %v700_v6 = vpack.c.bf16 %v135_v61, %v132_v60 }
  0x54   :  { %687 = vmatpush3.bf16.msra.mxu1 %v686_v27  ;;  %623 = vmatprep.subr.bf16.mxu0 %v622_v28  ;;  %v920_v5 = vld [vmem:[#allocation2 + $0x8] sm:$0xff]  ;;  %v87_v7 = vld [vmem:[#allocation7 + $0xe8] sm:$0xff]  ;;  %v128_v9 = vld [vmem:[#allocation7 + $0x230] sm:$0xff]  ;;  %v636_v13 = vpack.c.bf16 %v121_v3, %v118_v63  ;;  %v848_v63 = vmov 0.0|0.0  }
  0x55   :  { %689 = vmatprep.subr.bf16.mxu1 %v688_v32  ;;  %v125_v8 = vld [vmem:[#allocation7 + $0x218] sm:$0xff]  ;;  %410 = vmatprep.mubr.f32.mxu1 %v920_v5  ;;  %v138_v11 = vld [vmem:[#allocation7 + $0x280] sm:$0xff]  ;;  %v702_v14 = vpack.c.bf16 %v87_v7, %v84_v4  ;;  %v124_v16 = vld [vmem:[#allocation7 + $0x210] sm:$0xff] }
  0x56   :  { %v141_v12 = vld [vmem:[#allocation7 + $0x298] sm:$0xff]  ;;  %268 = vmatprep.mubr.f32.mxu0 %v920_v5  ;;  %v638_v15 = vpack.c.bf16 %v128_v9, %v125_v8  ;;  %v127_v17 = vld [vmem:[#allocation7 + $0x228] sm:$0xff]  ;;  %v90_v18 = vld [vmem:[#allocation7 + $0x100] sm:$0xff] }
  0x57   :  { %625 = vmatpush1.bf16.msra.mxu0 %v624_v38  ;;  %v704_v19 = vpack.c.bf16 %v141_v12, %v138_v11  ;;  %v93_v20 = vld [vmem:[#allocation7 + $0x118] sm:$0xff]  ;;  %v131_v21 = vld [vmem:[#allocation7 + $0x248] sm:$0xff]  ;;  %v134_v22 = vld [vmem:[#allocation7 + $0x260] sm:$0xff]  ;;  %v640_v26 = vpack.c.bf16 %v127_v17, %v124_v16 }
  0x58   :  { %691 = vmatpush3.bf16.msra.mxu1 %v690_v39  ;;  %627 = vmatprep.subr.bf16.mxu0 %v626_v40  ;;  %v144_v23 = vld [vmem:[#allocation7 + $0x2b0] sm:$0xff]  ;;  %v147_v24 = vld [vmem:[#allocation7 + $0x2c8] sm:$0xff]  ;;  %v706_v27 = vpack.c.bf16 %v93_v20, %v90_v18  ;;  %v642_v28 = vpack.c.bf16 %v134_v22, %v131_v21  ;;  %v130_v29 = vld [vmem:[#allocation7 + $0x240] sm:$0xff] }
  0x59   :  { %693 = vmatprep.subr.bf16.mxu1 %v692_v44  ;;  %v133_v30 = vld [vmem:[#allocation7 + $0x258] sm:$0xff]  ;;  %v96_v31 = vld [vmem:[#allocation7 + $0x130] sm:$0xff]  ;;  %v708_v32 = vpack.c.bf16 %v147_v24, %v144_v23  ;;  %v99_v33 = vld [vmem:[#allocation7 + $0x148] sm:$0xff] }
  0x5a   :  { %v137_v34 = vld [vmem:[#allocation7 + $0x278] sm:$0xff]  ;;  %v140_v35 = vld [vmem:[#allocation7 + $0x290] sm:$0xff]  ;;  %v150_v36 = vld [vmem:[#allocation7 + $0x2e0] sm:$0xff]  ;;  %v644_v38 = vpack.c.bf16 %v133_v30, %v130_v29  ;;  %v710_v39 = vpack.c.bf16 %v99_v33, %v96_v31 }
  0x5b   :  { %629 = vmatpush1.bf16.msra.mxu0 %v628_v50  ;;  %v153_v37 = vld [vmem:[#allocation7 + $0x2f8] sm:$0xff]  ;;  %v646_v40 = vpack.c.bf16 %v140_v35, %v137_v34  ;;  %v136_v41 = vld [vmem:[#allocation7 + $0x270] sm:$0xff]  ;;  %v139_v42 = vld [vmem:[#allocation7 + $0x288] sm:$0xff] }
  0x5c   :  { %695 = vmatpush3.bf16.msra.mxu1 %v694_v51  ;;  %631 = vmatprep.subr.bf16.mxu0 %v630_v52  ;;  %v102_v43 = vld [vmem:[#allocation7 + $0x160] sm:$0xff]  ;;  %v712_v44 = vpack.c.bf16 %v153_v37, %v150_v36  ;;  %v105_v45 = vld [vmem:[#allocation7 + $0x178] sm:$0xff]  ;;  %v143_v46 = vld [vmem:[#allocation7 + $0x2a8] sm:$0xff]  ;;  %v648_v48 = vpack.c.bf16 %v139_v42, %v136_v41 }
  0x5d   :  { %697 = vmatprep.subr.bf16.mxu1 %v696_v56  ;;  %v146_v47 = vld [vmem:[#allocation7 + $0x2c0] sm:$0xff]  ;;  %v714_v49 = vpack.c.bf16 %v105_v45, %v102_v43  ;;  %v145_v52 = vld [vmem:[#allocation7 + $0x2b8] sm:$0xff]  ;;  %v156_v53 = vld [vmem:[#allocation7 + $0x310] sm:$0xff] }
  0x5e   :  { %v650_v50 = vpack.c.bf16 %v146_v47, %v143_v46  ;;  %v142_v51 = vld [vmem:[#allocation7 + $0x2a0] sm:$0xff]  ;;  %v159_v54 = vld [vmem:[#allocation7 + $0x328] sm:$0xff]  ;;  %v149_v55 = vld [vmem:[#allocation7 + $0x2d8] sm:$0xff] }
  0x5f   :  { %633 = vmatpush1.bf16.msra.mxu0 %v632_v62  ;;  %v152_v56 = vld [vmem:[#allocation7 + $0x2f0] sm:$0xff]  ;;  %v652_v57 = vpack.c.bf16 %v145_v52, %v142_v51  ;;  %v717_v59 = vpack.c.bf16 %v159_v54, %v156_v53  ;;  %v151_v62 = vld [vmem:[#allocation7 + $0x2e8] sm:$0xff]  ;;  %v174_v9 = vld [vmem:[#allocation7 + $0x3a0] sm:$0xff] }
  0x60   :  { %699 = vmatpush3.bf16.msra.mxu1 %v698_v1  ;;  %635 = vmatprep.subr.bf16.mxu0 %v634_v2  ;;  %v52_v58 = vld [vmem:[#allocation2] sm:$0xff]  ;;  %v654_v60 = vpack.c.bf16 %v152_v56, %v149_v55  ;;  %v162_v1 = vld [vmem:[#allocation7 + $0x340] sm:$0xff]  ;;  %v165_v2 = vld [vmem:[#allocation7 + $0x358] sm:$0xff] }
  0x61   :  { %701 = vmatprep.subr.bf16.mxu1 %v700_v6  ;;  %v148_v61 = vld [vmem:[#allocation7 + $0x2d0] sm:$0xff]  ;;  %v720_v4 = vpack.c.bf16 %v165_v2, %v162_v1  ;;  %v171_v7 = vld [vmem:[#allocation7 + $0x388] sm:$0xff]  ;;  %v177_v11 = vld [vmem:[#allocation7 + $0x3b8] sm:$0xff] }
  0x62   :  { %v656_v3 = vpack.c.bf16 %v151_v62, %v148_v61  ;;  %v168_v6 = vld [vmem:[#allocation7 + $0x370] sm:$0xff]  ;;  %v726_v12 = vpack.c.bf16 %v177_v11, %v174_v9  ;;  %v186_v16 = vld [vmem:[#allocation7 + $0x400] sm:$0xff]  ;;  %v189_v17 = vld [vmem:[#allocation7 + $0x418] sm:$0x3f] }
  0x63   :  { %637 = vmatpush1.bf16.msra.mxu0 %v636_v13  ;;  %v723_v8 = vpack.c.bf16 %v171_v7, %v168_v6  ;;  %v180_v13 = vld [vmem:[#allocation7 + $0x3d0] sm:$0xff]  ;;  %v732_v18 = vpack.c.bf16 %v189_v17, %v186_v16 }
  0x64   :  { %703 = vmatpush3.bf16.msra.mxu1 %v702_v14  ;;  %639 = vmatprep.subr.bf16.mxu0 %v638_v15  ;;  %v183_v14 = vld [vmem:[#allocation7 + $0x3e8] sm:$0xff]  ;;  %v56_v30 = vld [vmem:[#allocation5 + $0x8] sm:$0xff] }
  0x65   :  { %705 = vmatprep.subr.bf16.mxu1 %v704_v19  ;;  %v729_v15 = vpack.c.bf16 %v183_v14, %v180_v13 }
  0x67   :  { %641 = vmatpush1.bf16.msra.mxu0 %v640_v26 }
  0x68   :  { %707 = vmatpush3.bf16.msra.mxu1 %v706_v27  ;;  %643 = vmatprep.subr.bf16.mxu0 %v642_v28  ;;  %v55_v27 = vld [vmem:[#allocation5] sm:$0xff] }
  0x69   :  { %709 = vmatprep.subr.bf16.mxu1 %v708_v32 }
  0x6b   :  { %645 = vmatpush1.bf16.msra.mxu0 %v644_v38  ;;  %v57_v38 = vld [vmem:[#allocation5 + $0x10] sm:$0xff] }
  0x6c   :  { %711 = vmatpush3.bf16.msra.mxu1 %v710_v39  ;;  %647 = vmatprep.subr.bf16.mxu0 %v646_v40 }
  0x6d   :  { %713 = vmatprep.subr.bf16.mxu1 %v712_v44 }
  0x6f   :  { %649 = vmatpush1.bf16.msra.mxu0 %v648_v48 }
  0x70   :  { %715 = vmatpush3.bf16.msra.mxu1 %v714_v49  ;;  %651 = vmatprep.subr.bf16.mxu0 %v650_v50 }
  0x71   :  { %716 = vmatprep.subr.bf16.mxu1 %v848_v63 }
  0x73   :  { %411 = vmatmul.mubr.f32.vlgmr.msra.gmra.mrb[2].mxu1 %v52_v58  ;;  %653 = vmatpush1.bf16.msra.mxu0 %v652_v57 }
  0x74   :  { %718 = vmatpush3.bf16.msra.mxu1 %v717_v59  ;;  %655 = vmatprep.subr.bf16.mxu0 %v654_v60 }
  0x75   :  { %719 = vmatprep.subr.bf16.mxu1 %v848_v63  ;;  %591 = vmatprep.mubr.msk.f32.mxu1 %vm849_vm4, %v846_v0 }
  0x77   :  { %657 = vmatpush1.bf16.msra.mxu0 %v656_v3 }
  0x78   :  { %721 = vmatpush3.bf16.msra.mxu1 %v720_v4 }
  0x79   :  { %722 = vmatprep.subr.bf16.mxu1 %v848_v63 }
  0x7a   :  { %269 = vmatmul.mubr.f32.vlgmr.msra.gmra.mrb[0].mxu0 %v52_v58 }
  0x7c   :  { %724 = vmatpush3.bf16.msra.mxu1 %v723_v8 }
  0x7d   :  { %725 = vmatprep.subr.bf16.mxu1 %v848_v63 }
  0x80   :  { %727 = vmatpush3.bf16.msra.mxu1 %v726_v12 }
  0x81   :  { %728 = vmatprep.subr.bf16.mxu1 %v848_v63 }
  0x84   :  { %730 = vmatpush3.bf16.msra.mxu1 %v729_v15 }
  0x85   :  { %731 = vmatprep.subr.bf16.mxu1 %v848_v63 }
  0x88   :  { %734 = vmatpush3.bf16.msk.msra.mxu1 %vm908_vm2, %v732_v18 }
  0x8b   :  { %592 = vmatmul.mubr.msk.f32.vlgmr.msra.gmra.mrb[4].mxu1 %vm190_vm3, %v914_v25 }
 0x126   :  { %v341_v0 = vpop.f32.mrb[0].mxu1 }
 0x127   :  { %v343_v19 = vpop.f32.mrb[1].mxu1 }
 0x146   :  { %v551_v20 = vpop.f32.mrb[2].mxu1 }
 0x147   :  { %v552_v21 = vpop.f32.mrb[3].mxu1 }
 0x148   :  { %v553_v22 = vadd.f32 %v552_v21, %v551_v20 }
 0x14d   :  { %v270_v23 = vpop.f32.mrb[0].mxu0 }
 0x14e   :  { %v342_v24 = vadd.f32 %v341_v0, %v270_v23  ;;  %v272_v26 = vpop.f32.mrb[1].mxu0 }
 0x14f   :  { %v344_v28 = vadd.f32 %v343_v19, %v272_v26 }
 0x150   :  { %v486_v29 = vsub.f32 %v342_v24, %v52_v58 }
 0x151   :  { %v487_v31 = vsub.f32 %v344_v28, %v920_v5 }
 0x152   :  { %v489_v32 = vmul.f32 %v486_v29, %v55_v27 }
 0x153   :  { %v490_v10 = vmul.f32 %v487_v31, %v56_v30 }
 0x154   :  { %v492_v33 = vadd.f32 %v489_v32, %v52_v58 }
 0x155   :  { %v493_v34 = vadd.f32 %v490_v10, %v920_v5 }
 0x156   :  { %495 = vst [vmem:[#allocation8] sm:$0xff] %v492_v33 }
 0x157   :  { %496 = vst [vmem:[#allocation8 + $0x8] sm:$0xff] %v493_v34 }
 0x15e   :  { %v482_v35 = vpop.f32.mrb[4].mxu1 }
 0x15f   :  { %v483_v36 = vadd.f32 %v553_v22, %v482_v35  ;;  %v593_v37 = vpop.f32.mrb[5].mxu1 }
 0x161   :  { %v488_v39 = vsub.f32 %v483_v36, %v914_v25 }
 0x163   :  { %v491_v40 = vmul.f32 %v488_v39, %v57_v38 }
 0x165   :  { %v494_v41 = vadd.f32 %v491_v40, %v914_v25 }
 0x167   :  { %497 = vst.msk [vmem:[#allocation8 + $0x10] sm:$0xff] %vm190_vm3, %v494_v41 }
 0x168   :  { %824 = shalt.err (!%p821_p0)
}
 0x169   :  { %s825_s25 = scalar_lea.hbm %s949_s3, 384 }
 0x16a   :  { %p826_p1 = scmp.ne.s32.totalorder %s949_s3, %s825_s25  ;;  %p829_p2 = scmp.lt.u32.totalorder %s825_s25, %s949_s3 }
 0x16c   :  { %p831_p3 = pnand %p829_p2, %p826_p1 }
 0x16e   :  { %834 = shalt.err (!%p831_p3)
}
 0x16f   :  { %507 = dma.vmem_to_hbm [thread:$0]  %s505_s21, 384, %s949_s3, [#allocation4]  }
 0x170   :  { %839 = dma.done.wait [#allocation4], 384  }
 0x171   :  { %840 = vsyncadd [#allocation4], 4294966912 }
 0x172   :  { %511 = vsyncpa [#allocation3], 1 }
 0x173   :  { %512 = vsyncpa [#allocation6], 1 }
 0x174   :  { %513 = vsyncpa [#allocation4], 1 }

</bundles_post_ra>
